<compile_context>
chip_gen: v7x
topology: tpu7x:2x2x1
jax: 0.10.0
libtpu: 0.0.40
codegen_flags: <defaults>
</compile_context>

<pallas_src>
import functools

import jax
import jax.numpy as jnp
from jax.experimental import pallas as pl
from jax.experimental.pallas import tpu as pltpu


# ----------------------------------------------------------------------------
# Plain-JAX glue (cheap, shape-dependent, sequential):
# ----------------------------------------------------------------------------
def _lbs_skel(w, Y_c, Y_t):
    # w: (M, J), Y_c: (bs, M, J, 3), Y_t: (bs, J, 3) -> (bs, M, 3)
    X = Y_t[:, None, :, :] + Y_c
    X = X * w[None, :, :, None]
    return X.sum(axis=-2)


def _split_raw_motion(raw_motion):
    bs, T, _ = raw_motion.shape
    position = raw_motion[..., -3:]
    rotation = raw_motion[..., :-3].reshape(bs, T, -1, 4)
    norm = jnp.linalg.norm(rotation, axis=-1, keepdims=True)
    rotation = rotation / jnp.maximum(norm, 1e-12)        # F.normalize semantics
    return rotation, position


def _quaternion_to_matrix(q):
    # real-first (w, x, y, z), pytorch3d convention
    r, i, j, k = q[..., 0], q[..., 1], q[..., 2], q[..., 3]
    two_s = 2.0 / jnp.sum(q * q, axis=-1)
    o = jnp.stack([
        1 - two_s * (j * j + k * k),
        two_s * (i * j - k * r),
        two_s * (i * k + j * r),
        two_s * (i * j + k * r),
        1 - two_s * (i * i + k * k),
        two_s * (j * k - i * r),
        two_s * (i * k - j * r),
        two_s * (j * k + i * r),
        1 - two_s * (i * i + j * j),
    ], axis=-1)
    return o.reshape(q.shape[:-1] + (3, 3))


def _fk_translations(topology, X_m, X_t):
    # TODO(synk): FK's per-joint parent-chain recursion (tiny 3x3 matmuls with a
    # sequential tree dependency) has no clean Pallas win; kept in plain JAX.
    quats = X_m[..., :-3].reshape(X_m.shape[:-1] + (-1, 4))   # (bs, T, J, 4)
    local_rot = _quaternion_to_matrix(quats)                  # (bs, T, J, 3, 3)
    root_pos = X_m[..., -3:]                                  # (bs, T, 3)

    n = len(topology)
    world_rot = [None] * n
    world_tr = [None] * n
    for i, pi in enumerate(topology):
        if pi == -1:
            world_rot[i] = local_rot[..., i, :, :]
            world_tr[i] = root_pos
            continue
        world_rot[i] = jnp.matmul(world_rot[pi], local_rot[..., i, :, :])
        tr = jnp.matmul(world_rot[pi], X_t[:, None, i, :, None])[..., 0]
        world_tr[i] = tr + world_tr[pi]                       # world=True
    return jnp.stack(world_tr, axis=-2)                       # (bs, T, J, 3)


def _weight_row(w, pattern_shape):
    """Broadcast a (batch/time independent) weight to a tiny per-sample row."""
    w = jnp.asarray(w, jnp.float32)
    if w.ndim > len(pattern_shape):       # collapse leading singleton dims
        w = w.reshape(w.shape[-len(pattern_shape):])
    return jnp.broadcast_to(w, pattern_shape).reshape(1, -1)


def _pick_block_b(bs):
    # Batch rows per grid step; multiples of 8 keep every BlockSpec legal,
    # otherwise process the whole batch in one step (it fits VMEM at MoCap sizes).
    for cand in (16, 8):
        if bs % cand == 0:
            return cand
    return bs


# ----------------------------------------------------------------------------
# Fused Pallas reduction over all six loss terms.
# ----------------------------------------------------------------------------
def _ae_loss_impl(Y_c, Y_t, Y_m, X_c, X_t, X_m,
                  marker_w, joint_w, offset_w, w_assign,
                  *, topology, betas):
    f32 = jnp.float32
    b1, b2, b3, b4 = (float(b) for b in betas)

    Y_c, X_c = Y_c.astype(f32), X_c.astype(f32)
    Y_t, X_t = Y_t.astype(f32), X_t.astype(f32)
    Y_m, X_m = Y_m.astype(f32), X_m.astype(f32)
    w_assign = w_assign.astype(f32)

    bs, M, J, _ = Y_c.shape
    T = Y_m.shape[1]

    # ---- cheap JAX glue ----
    Y_lbs = _lbs_skel(w_assign, Y_c, Y_t)                 # (bs, M, 3)
    X_lbs = _lbs_skel(w_assign, X_c, X_t)
    rot_y, pos_y = _split_raw_motion(Y_m)                 # (bs,T,J,4), (bs,T,3)
    rot_x, pos_x = _split_raw_motion(X_m)
    gtr_y = _fk_translations(topology, Y_m, Y_t)          # (bs, T, J, 3)
    gtr_x = _fk_translations(topology, X_m, X_t)

    # ---- free reshapes to lane-dense 2-D slabs (no pads, no copies) ----
    Cc, Clbs, Ct = M * J * 3, M * 3, J * 3
    Crot, Cfk, Cpos = J * 4, J * 3, T * 3

    yc2, xc2 = Y_c.reshape(bs, Cc), X_c.reshape(bs, Cc)
    ylbs2, xlbs2 = Y_lbs.reshape(bs, Clbs), X_lbs.reshape(bs, Clbs)
    yt2, xt2 = Y_t.reshape(bs, Ct), X_t.reshape(bs, Ct)
    yrot2, xrot2 = rot_y.reshape(bs * T, Crot), rot_x.reshape(bs * T, Crot)
    ygtr2, xgtr2 = gtr_y.reshape(bs * T, Cfk), gtr_x.reshape(bs * T, Cfk)
    ypos2, xpos2 = pos_y.reshape(bs, Cpos), pos_x.reshape(bs, Cpos)

    # ---- tiny un-broadcast weight rows (NOT full-size broadcasts) ----
    w_off_row = _weight_row(offset_w, (M, J, 3))          # (1, Cc)
    w_mark_row = _weight_row(marker_w, (M, 3))            # (1, Clbs)
    w_j3_row = _weight_row(joint_w, (J, 3))               # (1, Ct) == (1, Cfk)
    w_j4_row = _weight_row(joint_w, (J, 4))               # (1, Crot)

    # mean denominators (broadcast element counts, PyTorch .mean())
    inv_n_c = 1.0 / float(bs * M * J * 3)
    inv_n_lbs = 1.0 / float(bs * M * 3)
    inv_n_t = 1.0 / float(bs * J * 3)
    inv_n_rot = 1.0 / float(bs * T * J * 4)
    inv_n_fk = 1.0 / float(bs * T * J * 3)
    inv_n_pos = 1.0 / float(bs * T * 3)

    block_b = _pick_block_b(bs)
    grid = (bs // block_b,)

    def kernel(w_off_ref, w_mark_ref, w_j3_ref, w_j4_ref,
               yc_ref, xc_ref, ylbs_ref, xlbs_ref, yt_ref, xt_ref,
               yrot_ref, xrot_ref, ygtr_ref, xgtr_ref, ypos_ref, xpos_ref,
               out_ref,
               acc_c, acc_lbs, acc_t, acc_rot, acc_fk, acc_pos):
        step = pl.program_id(0)

        @pl.when(step == 0)
        def _init():
            acc_c[...] = jnp.zeros_like(acc_c)
            acc_lbs[...] = jnp.zeros_like(acc_lbs)
            acc_t[...] = jnp.zeros_like(acc_t)
            acc_rot[...] = jnp.zeros_like(acc_rot)
            acc_fk[...] = jnp.zeros_like(acc_fk)
            acc_pos[...] = jnp.zeros_like(acc_pos)

        # Pure VPU elementwise accumulation each step (no per-step cross-lane
        # reduce, no per-step SMEM scalar read-modify-write).
        acc_c[...] += jnp.abs(yc_ref[...] - xc_ref[...])
        acc_lbs[...] += jnp.abs(ylbs_ref[...] - xlbs_ref[...])
        acc_t[...] += jnp.abs(yt_ref[...] - xt_ref[...])
        dr = yrot_ref[...] - xrot_ref[...]
        acc_rot[...] += dr * dr
        dg = ygtr_ref[...] - xgtr_ref[...]
        acc_fk[...] += dg * dg
        dp = ypos_ref[...] - xpos_ref[...]
        acc_pos[...] += dp * dp

        @pl.when(step == pl.num_programs(0) - 1)
        def _finalize():
            # Weights depend only on the lane position -> apply once here.
            s_c = jnp.sum(w_off_ref[...] * acc_c[...])
            s_lbs = jnp.sum(w_mark_ref[...] * acc_lbs[...])
            s_t = jnp.sum(w_j3_ref[...] * acc_t[...])
            s_rot = jnp.sum(w_j4_ref[...] * acc_rot[...])
            s_fk = jnp.sum(w_j3_ref[...] * acc_fk[...])
            s_pos = jnp.sum(acc_pos[...])

            loss_c = b3 * s_c * inv_n_c + b4 * s_lbs * inv_n_lbs
            loss_t = s_t * inv_n_t
            loss_m = (b1 * s_rot * inv_n_rot
                      + b2 * (2.5 * s_fk * inv_n_fk + s_pos * inv_n_pos))
            out_ref[0, 0] = loss_c + loss_t + loss_m
            out_ref[0, 1] = loss_c
            out_ref[0, 2] = loss_t
            out_ref[0, 3] = loss_m

    def row_spec(rows, cols):
        return pl.BlockSpec((rows, cols), lambda i: (i, 0))

    def const_spec(cols):
        return pl.BlockSpec((1, cols), lambda i: (0, 0))

    in_specs = [
        const_spec(Cc), const_spec(Clbs), const_spec(Ct), const_spec(Crot),
        row_spec(block_b, Cc), row_spec(block_b, Cc),
        row_spec(block_b, Clbs), row_spec(block_b, Clbs),
        row_spec(block_b, Ct), row_spec(block_b, Ct),
        row_spec(block_b * T, Crot), row_spec(block_b * T, Crot),
        row_spec(block_b * T, Cfk), row_spec(block_b * T, Cfk),
        row_spec(block_b, Cpos), row_spec(block_b, Cpos),
    ]

    out = pl.pallas_call(
        kernel,
        out_shape=jax.ShapeDtypeStruct((1, 4), jnp.float32),
        grid_spec=pltpu.PrefetchScalarGridSpec(
            num_scalar_prefetch=0,
            grid=grid,
            in_specs=in_specs,
            out_specs=pl.BlockSpec((1, 4), lambda i: (0, 0),
                                   memory_space=pltpu.SMEM),
            scratch_shapes=[
                pltpu.VMEM((block_b, Cc), jnp.float32),
                pltpu.VMEM((block_b, Clbs), jnp.float32),
                pltpu.VMEM((block_b, Ct), jnp.float32),
                pltpu.VMEM((block_b * T, Crot), jnp.float32),
                pltpu.VMEM((block_b * T, Cfk), jnp.float32),
                pltpu.VMEM((block_b, Cpos), jnp.float32),
            ],
        ),
        compiler_params=pltpu.CompilerParams(
            dimension_semantics=("arbitrary",),      # batch axis carries accumulators
            vmem_limit_bytes=32 * 1024 * 1024,
        ),
    )(w_off_row, w_mark_row, w_j3_row, w_j4_row,
      yc2, xc2, ylbs2, xlbs2, yt2, xt2,
      yrot2, xrot2, ygtr2, xgtr2, ypos2, xpos2)

    return out[0, 0], out[0, 1], out[0, 2], out[0, 3]


class AELoss:
    """JAX/Pallas equivalent of models.mocap_solver.utils.AE_loss."""

    def __init__(self, joint_topology, marker_weights, joint_weights,
                 offset_weights, betas, weight_assignment):
        self.topology = tuple(int(p) for p in joint_topology)
        self.betas = tuple(float(b) for b in betas)
        self.marker_weights = jnp.asarray(marker_weights, jnp.float32)
        self.joint_weights = jnp.asarray(joint_weights, jnp.float32)
        self.offset_weights = jnp.asarray(offset_weights, jnp.float32)
        self.w = jnp.asarray(weight_assignment, jnp.float32)
        self._impl = jax.jit(functools.partial(
            _ae_loss_impl, topology=self.topology, betas=self.betas))

    def __call__(self, Y, X):
        Y_c, Y_t, Y_m = Y
        X_c, X_t, X_m = X
        return self._impl(Y_c, Y_t, Y_m, X_c, X_t, X_m,
                          self.marker_weights, self.joint_weights,
                          self.offset_weights, self.w)


# ----------------------------------------------------------------------------
# Pure-JAX reference (mirrors the PyTorch forward) for correctness checking.
# ----------------------------------------------------------------------------
def _reference(Y, X, marker_w, joint_w, offset_w, w_assign, topology, betas):
    b1, b2, b3, b4 = betas
    Y_c, Y_t, Y_m = (a.astype(jnp.float32) for a in Y)
    X_c, X_t, X_m = (a.astype(jnp.float32) for a in X)

    Y_lbs = _lbs_skel(w_assign, Y_c, Y_t)
    X_lbs = _lbs_skel(w_assign, X_c, X_t)
    rot_y, pos_y = _split_raw_motion(Y_m)
    rot_x, pos_x = _split_raw_motion(X_m)
    gtr_y = _fk_translations(topology, Y_m, Y_t)
    gtr_x = _fk_translations(topology, X_m, X_t)

    def wmean(w, v):
        return jnp.mean(jnp.broadcast_to(jnp.asarray(w, jnp.float32), v.shape) * v)

    loss_c = (b3 * wmean(offset_w, jnp.abs(Y_c - X_c))
              + b4 * wmean(marker_w, jnp.abs(Y_lbs - X_lbs)))
    loss_t = wmean(joint_w, jnp.abs(Y_t - X_t))
    loss_m = (b1 * wmean(joint_w, (rot_y - rot_x) ** 2)
              + b2 * (2.5 * wmean(joint_w, (gtr_y - gtr_x) ** 2)
                      + jnp.mean((pos_y - pos_x) ** 2)))
    loss = loss_c + loss_t + loss_m
    return loss, loss_c, loss_t, loss_m


if __name__ == "__main__":
    key = jax.random.PRNGKey(0)
    keys = jax.random.split(key, 10)

    bs, T, J, M = 2, 8, 8, 16
    topology = (-1, 0, 1, 2, 3, 0, 5, 6)        # parent index per joint, root first
    betas = (1.0, 2.0, 5.0, 10.0)               # (b1, b2, b3, b4)

    Y_c = 0.1 * jax.random.normal(keys[0], (bs, M, J, 3), jnp.float32)
    X_c = 0.1 * jax.random.normal(keys[1], (bs, M, J, 3), jnp.float32)
    Y_t = jax.random.normal(keys[2], (bs, J, 3), jnp.float32)
    X_t = jax.random.normal(keys[3], (bs, J, 3), jnp.float32)
    Y_m = jax.random.normal(keys[4], (bs, T, J * 4 + 3), jnp.float32)
    X_m = jax.random.normal(keys[5], (bs, T, J * 4 + 3), jnp.float32)

    marker_weights = jax.random.uniform(keys[6], (M, 1), jnp.float32, minval=0.5, maxval=1.5)
    joint_weights = jax.random.uniform(keys[7], (J, 1), jnp.float32, minval=0.5, maxval=1.5)
    offset_weights = jax.random.uniform(keys[8], (M, J, 1), jnp.float32, minval=0.5, maxval=1.5)
    weight_assignment = jax.random.uniform(keys[9], (M, J), jnp.float32, minval=0.0, maxval=1.0)

    loss_fn = AELoss(topology, marker_weights, joint_weights, offset_weights,
                     betas, weight_assignment)
    Y = (Y_c, Y_t, Y_m)
    X = (X_c, X_t, X_m)

    out = loss_fn(Y, X)
    out = jax.block_until_ready(out)

    ref = _reference(Y, X, marker_weights, joint_weights, offset_weights,
                     weight_assignment, topology, betas)
    names = ("loss", "loss_c", "loss_t", "loss_m")
    for name, got, want in zip(names, out, ref):
        assert jnp.allclose(got, want, rtol=1e-4, atol=1e-4), (name, got, want)

    print("KERNEL_OK")
</pallas_src>

<mosaic_0001>
module attributes {stable_mosaic.version = 11 : i64} {
  func.func @kernel(%arg0: i32, %arg1: memref<1x384xf32, #tpu.memory_space<vmem>>, %arg2: memref<1x48xf32, #tpu.memory_space<vmem>>, %arg3: memref<1x24xf32, #tpu.memory_space<vmem>>, %arg4: memref<1x32xf32, #tpu.memory_space<vmem>>, %arg5: memref<2x384xf32, #tpu.memory_space<vmem>>, %arg6: memref<2x384xf32, #tpu.memory_space<vmem>>, %arg7: memref<2x48xf32, #tpu.memory_space<vmem>>, %arg8: memref<2x48xf32, #tpu.memory_space<vmem>>, %arg9: memref<2x24xf32, #tpu.memory_space<vmem>>, %arg10: memref<2x24xf32, #tpu.memory_space<vmem>>, %arg11: memref<16x32xf32, #tpu.memory_space<vmem>>, %arg12: memref<16x32xf32, #tpu.memory_space<vmem>>, %arg13: memref<16x24xf32, #tpu.memory_space<vmem>>, %arg14: memref<16x24xf32, #tpu.memory_space<vmem>>, %arg15: memref<2x24xf32, #tpu.memory_space<vmem>>, %arg16: memref<2x24xf32, #tpu.memory_space<vmem>>, %arg17: memref<1x4xf32, #tpu.memory_space<smem>>, %arg18: memref<2x384xf32, #tpu.memory_space<vmem>>, %arg19: memref<2x48xf32, #tpu.memory_space<vmem>>, %arg20: memref<2x24xf32, #tpu.memory_space<vmem>>, %arg21: memref<16x32xf32, #tpu.memory_space<vmem>>, %arg22: memref<16x24xf32, #tpu.memory_space<vmem>>, %arg23: memref<2x24xf32, #tpu.memory_space<vmem>>) attributes {dimension_semantics = [#tpu.dimension_semantics<arbitrary>], iteration_bounds = array<i64: 1>, scalar_prefetch = 0 : i64, scratch_operands = 6 : i64, tpu.core_type = #tpu.core_type<tc>, window_params = [{pipeline_mode = #tpu.pipeline_mode<synchronous>, transform_indices = @transform_0, window_bounds = array<i64: 1, 384>}, {pipeline_mode = #tpu.pipeline_mode<synchronous>, transform_indices = @transform_1, window_bounds = array<i64: 1, 48>}, {pipeline_mode = #tpu.pipeline_mode<synchronous>, transform_indices = @transform_2, window_bounds = array<i64: 1, 24>}, {pipeline_mode = #tpu.pipeline_mode<synchronous>, transform_indices = @transform_3, window_bounds = array<i64: 1, 32>}, {transform_indices = @transform_4, window_bounds = array<i64: 2, 384>}, {transform_indices = @transform_5, window_bounds = array<i64: 2, 384>}, {transform_indices = @transform_6, window_bounds = array<i64: 2, 48>}, {transform_indices = @transform_7, window_bounds = array<i64: 2, 48>}, {transform_indices = @transform_8, window_bounds = array<i64: 2, 24>}, {transform_indices = @transform_9, window_bounds = array<i64: 2, 24>}, {transform_indices = @transform_10, window_bounds = array<i64: 16, 32>}, {transform_indices = @transform_11, window_bounds = array<i64: 16, 32>}, {transform_indices = @transform_12, window_bounds = array<i64: 16, 24>}, {transform_indices = @transform_13, window_bounds = array<i64: 16, 24>}, {transform_indices = @transform_14, window_bounds = array<i64: 2, 24>}, {transform_indices = @transform_15, window_bounds = array<i64: 2, 24>}, {transform_indices = @transform_16, window_bounds = array<i64: 1, 4>}]} {
    %c0_i32 = arith.constant 0 : i32
    %0 = arith.cmpi eq, %arg0, %c0_i32 : i32
    %1 = arith.extui %0 : i1 to i32
    %c0_i32_0 = arith.constant 0 : i32
    %2 = arith.cmpi ne, %1, %c0_i32_0 : i32
    scf.if %2 {
      %cst = arith.constant 0.000000e+00 : f32
      %48 = vector.broadcast %cst : f32 to vector<2x384xf32>
      %c0_50 = arith.constant 0 : index
      %c0_51 = arith.constant 0 : index
      %49 = vector.load %arg18[%c0_50, %c0_51] : memref<2x384xf32, #tpu.memory_space<vmem>>, vector<2x384xf32>
      tpu.vector_store %arg18[%c0_50, %c0_51], %48 {strides = array<i32>} : memref<2x384xf32, #tpu.memory_space<vmem>>, vector<2x384xf32>,
      %cst_52 = arith.constant 0.000000e+00 : f32
      %50 = vector.broadcast %cst_52 : f32 to vector<2x48xf32>
      %c0_53 = arith.constant 0 : index
      %c0_54 = arith.constant 0 : index
      %51 = vector.load %arg19[%c0_53, %c0_54] : memref<2x48xf32, #tpu.memory_space<vmem>>, vector<2x48xf32>
      tpu.vector_store %arg19[%c0_53, %c0_54], %50 {strides = array<i32>} : memref<2x48xf32, #tpu.memory_space<vmem>>, vector<2x48xf32>,
      %cst_55 = arith.constant 0.000000e+00 : f32
      %52 = vector.broadcast %cst_55 : f32 to vector<2x24xf32>
      %c0_56 = arith.constant 0 : index
      %c0_57 = arith.constant 0 : index
      %53 = vector.load %arg20[%c0_56, %c0_57] : memref<2x24xf32, #tpu.memory_space<vmem>>, vector<2x24xf32>
      tpu.vector_store %arg20[%c0_56, %c0_57], %52 {strides = array<i32>} : memref<2x24xf32, #tpu.memory_space<vmem>>, vector<2x24xf32>,
      %cst_58 = arith.constant 0.000000e+00 : f32
      %54 = vector.broadcast %cst_58 : f32 to vector<16x32xf32>
      %c0_59 = arith.constant 0 : index
      %c0_60 = arith.constant 0 : index
      %55 = vector.load %arg21[%c0_59, %c0_60] : memref<16x32xf32, #tpu.memory_space<vmem>>, vector<16x32xf32>
      tpu.vector_store %arg21[%c0_59, %c0_60], %54 {strides = array<i32>} : memref<16x32xf32, #tpu.memory_space<vmem>>, vector<16x32xf32>,
      %cst_61 = arith.constant 0.000000e+00 : f32
      %56 = vector.broadcast %cst_61 : f32 to vector<16x24xf32>
      %c0_62 = arith.constant 0 : index
      %c0_63 = arith.constant 0 : index
      %57 = vector.load %arg22[%c0_62, %c0_63] : memref<16x24xf32, #tpu.memory_space<vmem>>, vector<16x24xf32>
      tpu.vector_store %arg22[%c0_62, %c0_63], %56 {strides = array<i32>} : memref<16x24xf32, #tpu.memory_space<vmem>>, vector<16x24xf32>,
      %cst_64 = arith.constant 0.000000e+00 : f32
      %58 = vector.broadcast %cst_64 : f32 to vector<2x24xf32>
      %c0_65 = arith.constant 0 : index
      %c0_66 = arith.constant 0 : index
      %59 = vector.load %arg23[%c0_65, %c0_66] : memref<2x24xf32, #tpu.memory_space<vmem>>, vector<2x24xf32>
      tpu.vector_store %arg23[%c0_65, %c0_66], %58 {strides = array<i32>} : memref<2x24xf32, #tpu.memory_space<vmem>>, vector<2x24xf32>,
    } else {
    }
    %c0 = arith.constant 0 : index
    %c0_1 = arith.constant 0 : index
    %3 = vector.load %arg18[%c0, %c0_1] : memref<2x384xf32, #tpu.memory_space<vmem>>, vector<2x384xf32>
    %c0_2 = arith.constant 0 : index
    %c0_3 = arith.constant 0 : index
    %4 = vector.load %arg5[%c0_2, %c0_3] : memref<2x384xf32, #tpu.memory_space<vmem>>, vector<2x384xf32>
    %c0_4 = arith.constant 0 : index
    %c0_5 = arith.constant 0 : index
    %5 = vector.load %arg6[%c0_4, %c0_5] : memref<2x384xf32, #tpu.memory_space<vmem>>, vector<2x384xf32>
    %6 = arith.subf %4, %5 : vector<2x384xf32>
    %7 = math.absf %6 : vector<2x384xf32>
    %8 = arith.addf %3, %7 : vector<2x384xf32>
    %c0_6 = arith.constant 0 : index
    %c0_7 = arith.constant 0 : index
    %9 = vector.load %arg18[%c0_6, %c0_7] : memref<2x384xf32, #tpu.memory_space<vmem>>, vector<2x384xf32>
    tpu.vector_store %arg18[%c0_6, %c0_7], %8 {strides = array<i32>} : memref<2x384xf32, #tpu.memory_space<vmem>>, vector<2x384xf32>,
    %c0_8 = arith.constant 0 : index
    %c0_9 = arith.constant 0 : index
    %10 = vector.load %arg19[%c0_8, %c0_9] : memref<2x48xf32, #tpu.memory_space<vmem>>, vector<2x48xf32>
    %c0_10 = arith.constant 0 : index
    %c0_11 = arith.constant 0 : index
    %11 = vector.load %arg7[%c0_10, %c0_11] : memref<2x48xf32, #tpu.memory_space<vmem>>, vector<2x48xf32>
    %c0_12 = arith.constant 0 : index
    %c0_13 = arith.constant 0 : index
    %12 = vector.load %arg8[%c0_12, %c0_13] : memref<2x48xf32, #tpu.memory_space<vmem>>, vector<2x48xf32>
    %13 = arith.subf %11, %12 : vector<2x48xf32>
    %14 = math.absf %13 : vector<2x48xf32>
    %15 = arith.addf %10, %14 : vector<2x48xf32>
    %c0_14 = arith.constant 0 : index
    %c0_15 = arith.constant 0 : index
    %16 = vector.load %arg19[%c0_14, %c0_15] : memref<2x48xf32, #tpu.memory_space<vmem>>, vector<2x48xf32>
    tpu.vector_store %arg19[%c0_14, %c0_15], %15 {strides = array<i32>} : memref<2x48xf32, #tpu.memory_space<vmem>>, vector<2x48xf32>,
    %c0_16 = arith.constant 0 : index
    %c0_17 = arith.constant 0 : index
    %17 = vector.load %arg20[%c0_16, %c0_17] : memref<2x24xf32, #tpu.memory_space<vmem>>, vector<2x24xf32>
    %c0_18 = arith.constant 0 : index
    %c0_19 = arith.constant 0 : index
    %18 = vector.load %arg9[%c0_18, %c0_19] : memref<2x24xf32, #tpu.memory_space<vmem>>, vector<2x24xf32>
    %c0_20 = arith.constant 0 : index
    %c0_21 = arith.constant 0 : index
    %19 = vector.load %arg10[%c0_20, %c0_21] : memref<2x24xf32, #tpu.memory_space<vmem>>, vector<2x24xf32>
    %20 = arith.subf %18, %19 : vector<2x24xf32>
    %21 = math.absf %20 : vector<2x24xf32>
    %22 = arith.addf %17, %21 : vector<2x24xf32>
    %c0_22 = arith.constant 0 : index
    %c0_23 = arith.constant 0 : index
    %23 = vector.load %arg20[%c0_22, %c0_23] : memref<2x24xf32, #tpu.memory_space<vmem>>, vector<2x24xf32>
    tpu.vector_store %arg20[%c0_22, %c0_23], %22 {strides = array<i32>} : memref<2x24xf32, #tpu.memory_space<vmem>>, vector<2x24xf32>,
    %c0_24 = arith.constant 0 : index
    %c0_25 = arith.constant 0 : index
    %24 = vector.load %arg11[%c0_24, %c0_25] : memref<16x32xf32, #tpu.memory_space<vmem>>, vector<16x32xf32>
    %c0_26 = arith.constant 0 : index
    %c0_27 = arith.constant 0 : index
    %25 = vector.load %arg12[%c0_26, %c0_27] : memref<16x32xf32, #tpu.memory_space<vmem>>, vector<16x32xf32>
    %26 = arith.subf %24, %25 : vector<16x32xf32>
    %c0_28 = arith.constant 0 : index
    %c0_29 = arith.constant 0 : index
    %27 = vector.load %arg21[%c0_28, %c0_29] : memref<16x32xf32, #tpu.memory_space<vmem>>, vector<16x32xf32>
    %28 = arith.mulf %26, %26 : vector<16x32xf32>
    %29 = arith.addf %27, %28 : vector<16x32xf32>
    %c0_30 = arith.constant 0 : index
    %c0_31 = arith.constant 0 : index
    %30 = vector.load %arg21[%c0_30, %c0_31] : memref<16x32xf32, #tpu.memory_space<vmem>>, vector<16x32xf32>
    tpu.vector_store %arg21[%c0_30, %c0_31], %29 {strides = array<i32>} : memref<16x32xf32, #tpu.memory_space<vmem>>, vector<16x32xf32>,
    %c0_32 = arith.constant 0 : index
    %c0_33 = arith.constant 0 : index
    %31 = vector.load %arg13[%c0_32, %c0_33] : memref<16x24xf32, #tpu.memory_space<vmem>>, vector<16x24xf32>
    %c0_34 = arith.constant 0 : index
    %c0_35 = arith.constant 0 : index
    %32 = vector.load %arg14[%c0_34, %c0_35] : memref<16x24xf32, #tpu.memory_space<vmem>>, vector<16x24xf32>
    %33 = arith.subf %31, %32 : vector<16x24xf32>
    %c0_36 = arith.constant 0 : index
    %c0_37 = arith.constant 0 : index
    %34 = vector.load %arg22[%c0_36, %c0_37] : memref<16x24xf32, #tpu.memory_space<vmem>>, vector<16x24xf32>
    %35 = arith.mulf %33, %33 : vector<16x24xf32>
    %36 = arith.addf %34, %35 : vector<16x24xf32>
    %c0_38 = arith.constant 0 : index
    %c0_39 = arith.constant 0 : index
    %37 = vector.load %arg22[%c0_38, %c0_39] : memref<16x24xf32, #tpu.memory_space<vmem>>, vector<16x24xf32>
    tpu.vector_store %arg22[%c0_38, %c0_39], %36 {strides = array<i32>} : memref<16x24xf32, #tpu.memory_space<vmem>>, vector<16x24xf32>,
    %c0_40 = arith.constant 0 : index
    %c0_41 = arith.constant 0 : index
    %38 = vector.load %arg15[%c0_40, %c0_41] : memref<2x24xf32, #tpu.memory_space<vmem>>, vector<2x24xf32>
    %c0_42 = arith.constant 0 : index
    %c0_43 = arith.constant 0 : index
    %39 = vector.load %arg16[%c0_42, %c0_43] : memref<2x24xf32, #tpu.memory_space<vmem>>, vector<2x24xf32>
    %40 = arith.subf %38, %39 : vector<2x24xf32>
    %c0_44 = arith.constant 0 : index
    %c0_45 = arith.constant 0 : index
    %41 = vector.load %arg23[%c0_44, %c0_45] : memref<2x24xf32, #tpu.memory_space<vmem>>, vector<2x24xf32>
    %42 = arith.mulf %40, %40 : vector<2x24xf32>
    %43 = arith.addf %41, %42 : vector<2x24xf32>
    %c0_46 = arith.constant 0 : index
    %c0_47 = arith.constant 0 : index
    %44 = vector.load %arg23[%c0_46, %c0_47] : memref<2x24xf32, #tpu.memory_space<vmem>>, vector<2x24xf32>
    tpu.vector_store %arg23[%c0_46, %c0_47], %43 {strides = array<i32>} : memref<2x24xf32, #tpu.memory_space<vmem>>, vector<2x24xf32>,
    %c0_i32_48 = arith.constant 0 : i32
    %45 = arith.cmpi eq, %arg0, %c0_i32_48 : i32
    %46 = arith.extui %45 : i1 to i32
    %c0_i32_49 = arith.constant 0 : i32
    %47 = arith.cmpi ne, %46, %c0_i32_49 : i32
    scf.if %47 {
      %c0_50 = arith.constant 0 : index
      %c0_51 = arith.constant 0 : index
      %48 = vector.load %arg1[%c0_50, %c0_51] : memref<1x384xf32, #tpu.memory_space<vmem>>, vector<1x384xf32>
      %c0_52 = arith.constant 0 : index
      %c0_53 = arith.constant 0 : index
      %49 = vector.load %arg18[%c0_52, %c0_53] : memref<2x384xf32, #tpu.memory_space<vmem>>, vector<2x384xf32>
      %50 = vector.broadcast %48 : vector<1x384xf32> to vector<2x384xf32>
      %51 = arith.mulf %50, %49 : vector<2x384xf32>
      %52 = vector.shape_cast %51 : vector<2x384xf32> to vector<1x2x384xf32>
      %cst = arith.constant dense<0.000000e+00> : vector<1xf32>
      %53 = vector.multi_reduction <add>, %52, %cst [1, 2] : vector<1x2x384xf32> to vector<1xf32>
      %54 = vector.shape_cast %53 : vector<1xf32> to vector<1x1x1xf32>
      %55 = vector.extract %54[0, 0, 0] : f32 from vector<1x1x1xf32>
      %c0_54 = arith.constant 0 : index
      %c0_55 = arith.constant 0 : index
      %56 = vector.load %arg2[%c0_54, %c0_55] : memref<1x48xf32, #tpu.memory_space<vmem>>, vector<1x48xf32>
      %c0_56 = arith.constant 0 : index
      %c0_57 = arith.constant 0 : index
      %57 = vector.load %arg19[%c0_56, %c0_57] : memref<2x48xf32, #tpu.memory_space<vmem>>, vector<2x48xf32>
      %58 = vector.broadcast %56 : vector<1x48xf32> to vector<2x48xf32>
      %59 = arith.mulf %58, %57 : vector<2x48xf32>
      %60 = vector.shape_cast %59 : vector<2x48xf32> to vector<1x2x48xf32>
      %cst_58 = arith.constant dense<0.000000e+00> : vector<1xf32>
      %61 = vector.multi_reduction <add>, %60, %cst_58 [1, 2] : vector<1x2x48xf32> to vector<1xf32>
      %62 = vector.shape_cast %61 : vector<1xf32> to vector<1x1x1xf32>
      %63 = vector.extract %62[0, 0, 0] : f32 from vector<1x1x1xf32>
      %c0_59 = arith.constant 0 : index
      %c0_60 = arith.constant 0 : index
      %64 = vector.load %arg3[%c0_59, %c0_60] : memref<1x24xf32, #tpu.memory_space<vmem>>, vector<1x24xf32>
      %c0_61 = arith.constant 0 : index
      %c0_62 = arith.constant 0 : index
      %65 = vector.load %arg20[%c0_61, %c0_62] : memref<2x24xf32, #tpu.memory_space<vmem>>, vector<2x24xf32>
      %66 = vector.broadcast %64 : vector<1x24xf32> to vector<2x24xf32>
      %67 = arith.mulf %66, %65 : vector<2x24xf32>
      %68 = vector.shape_cast %67 : vector<2x24xf32> to vector<1x2x24xf32>
      %cst_63 = arith.constant dense<0.000000e+00> : vector<1xf32>
      %69 = vector.multi_reduction <add>, %68, %cst_63 [1, 2] : vector<1x2x24xf32> to vector<1xf32>
      %70 = vector.shape_cast %69 : vector<1xf32> to vector<1x1x1xf32>
      %71 = vector.extract %70[0, 0, 0] : f32 from vector<1x1x1xf32>
      %c0_64 = arith.constant 0 : index
      %c0_65 = arith.constant 0 : index
      %72 = vector.load %arg4[%c0_64, %c0_65] : memref<1x32xf32, #tpu.memory_space<vmem>>, vector<1x32xf32>
      %c0_66 = arith.constant 0 : index
      %c0_67 = arith.constant 0 : index
      %73 = vector.load %arg21[%c0_66, %c0_67] : memref<16x32xf32, #tpu.memory_space<vmem>>, vector<16x32xf32>
      %74 = vector.broadcast %72 : vector<1x32xf32> to vector<16x32xf32>
      %75 = arith.mulf %74, %73 : vector<16x32xf32>
      %76 = vector.shape_cast %75 : vector<16x32xf32> to vector<1x16x32xf32>
      %cst_68 = arith.constant dense<0.000000e+00> : vector<1xf32>
      %77 = vector.multi_reduction <add>, %76, %cst_68 [1, 2] : vector<1x16x32xf32> to vector<1xf32>
      %78 = vector.shape_cast %77 : vector<1xf32> to vector<1x1x1xf32>
      %79 = vector.extract %78[0, 0, 0] : f32 from vector<1x1x1xf32>
      %c0_69 = arith.constant 0 : index
      %c0_70 = arith.constant 0 : index
      %80 = vector.load %arg3[%c0_69, %c0_70] : memref<1x24xf32, #tpu.memory_space<vmem>>, vector<1x24xf32>
      %c0_71 = arith.constant 0 : index
      %c0_72 = arith.constant 0 : index
      %81 = vector.load %arg22[%c0_71, %c0_72] : memref<16x24xf32, #tpu.memory_space<vmem>>, vector<16x24xf32>
      %82 = vector.broadcast %80 : vector<1x24xf32> to vector<16x24xf32>
      %83 = arith.mulf %82, %81 : vector<16x24xf32>
      %84 = vector.shape_cast %83 : vector<16x24xf32> to vector<1x16x24xf32>
      %cst_73 = arith.constant dense<0.000000e+00> : vector<1xf32>
      %85 = vector.multi_reduction <add>, %84, %cst_73 [1, 2] : vector<1x16x24xf32> to vector<1xf32>
      %86 = vector.shape_cast %85 : vector<1xf32> to vector<1x1x1xf32>
      %87 = vector.extract %86[0, 0, 0] : f32 from vector<1x1x1xf32>
      %c0_74 = arith.constant 0 : index
      %c0_75 = arith.constant 0 : index
      %88 = vector.load %arg23[%c0_74, %c0_75] : memref<2x24xf32, #tpu.memory_space<vmem>>, vector<2x24xf32>
      %89 = vector.shape_cast %88 : vector<2x24xf32> to vector<1x2x24xf32>
      %cst_76 = arith.constant dense<0.000000e+00> : vector<1xf32>
      %90 = vector.multi_reduction <add>, %89, %cst_76 [1, 2] : vector<1x2x24xf32> to vector<1xf32>
      %91 = vector.shape_cast %90 : vector<1xf32> to vector<1x1x1xf32>
      %92 = vector.extract %91[0, 0, 0] : f32 from vector<1x1x1xf32>
      %cst_77 = arith.constant 5.000000e+00 : f32
      %93 = arith.mulf %cst_77, %55 : f32
      %cst_78 = arith.constant 0.00130208337 : f32
      %94 = arith.mulf %93, %cst_78 : f32
      %cst_79 = arith.constant 1.000000e+01 : f32
      %95 = arith.mulf %cst_79, %63 : f32
      %cst_80 = arith.constant 0.010416667 : f32
      %96 = arith.mulf %95, %cst_80 : f32
      %97 = arith.addf %94, %96 : f32
      %cst_81 = arith.constant 0.020833334 : f32
      %98 = arith.mulf %71, %cst_81 : f32
      %cst_82 = arith.constant 1.000000e+00 : f32
      %99 = arith.mulf %cst_82, %79 : f32
      %cst_83 = arith.constant 0.001953125 : f32
      %100 = arith.mulf %99, %cst_83 : f32
      %cst_84 = arith.constant 2.500000e+00 : f32
      %101 = arith.mulf %cst_84, %87 : f32
      %cst_85 = arith.constant 0.00260416674 : f32
      %102 = arith.mulf %101, %cst_85 : f32
      %cst_86 = arith.constant 0.020833334 : f32
      %103 = arith.mulf %92, %cst_86 : f32
      %104 = arith.addf %102, %103 : f32
      %cst_87 = arith.constant 2.000000e+00 : f32
      %105 = arith.mulf %cst_87, %104 : f32
      %106 = arith.addf %100, %105 : f32
      %107 = arith.addf %97, %98 : f32
      %108 = arith.addf %107, %106 : f32
      %c0_88 = arith.constant 0 : index
      %c0_89 = arith.constant 0 : index
      %109 = memref.load %arg17[%c0_88, %c0_89] : memref<1x4xf32, #tpu.memory_space<smem>>
      memref.store %108, %arg17[%c0_88, %c0_89] : memref<1x4xf32, #tpu.memory_space<smem>>
      %c0_90 = arith.constant 0 : index
      %c1 = arith.constant 1 : index
      %110 = memref.load %arg17[%c0_90, %c1] : memref<1x4xf32, #tpu.memory_space<smem>>
      memref.store %97, %arg17[%c0_90, %c1] : memref<1x4xf32, #tpu.memory_space<smem>>
      %c0_91 = arith.constant 0 : index
      %c2 = arith.constant 2 : index
      %111 = memref.load %arg17[%c0_91, %c2] : memref<1x4xf32, #tpu.memory_space<smem>>
      memref.store %98, %arg17[%c0_91, %c2] : memref<1x4xf32, #tpu.memory_space<smem>>
      %c0_92 = arith.constant 0 : index
      %c3 = arith.constant 3 : index
      %112 = memref.load %arg17[%c0_92, %c3] : memref<1x4xf32, #tpu.memory_space<smem>>
      memref.store %106, %arg17[%c0_92, %c3] : memref<1x4xf32, #tpu.memory_space<smem>>
    } else {
    }
    return
  }
  func.func @transform_0(%arg0: i32) -> (i32, i32) {
    %c0_i32 = arith.constant 0 : i32
    %c0_i32_0 = arith.constant 0 : i32
    %c0_i32_1 = arith.constant 0 : i32
    return %c0_i32, %c0_i32_0 : i32, i32
  }
  func.func @transform_1(%arg0: i32) -> (i32, i32) {
    %c0_i32 = arith.constant 0 : i32
    %c0_i32_0 = arith.constant 0 : i32
    %c0_i32_1 = arith.constant 0 : i32
    return %c0_i32, %c0_i32_0 : i32, i32
  }
  func.func @transform_2(%arg0: i32) -> (i32, i32) {
    %c0_i32 = arith.constant 0 : i32
    %c0_i32_0 = arith.constant 0 : i32
    %c0_i32_1 = arith.constant 0 : i32
    return %c0_i32, %c0_i32_0 : i32, i32
  }
  func.func @transform_3(%arg0: i32) -> (i32, i32) {
    %c0_i32 = arith.constant 0 : i32
    %c0_i32_0 = arith.constant 0 : i32
    %c0_i32_1 = arith.constant 0 : i32
    return %c0_i32, %c0_i32_0 : i32, i32
  }
  func.func @transform_4(%arg0: i32) -> (i32, i32) {
    %c0_i32 = arith.constant 0 : i32
    %c0_i32_0 = arith.constant 0 : i32
    return %arg0, %c0_i32 : i32, i32
  }
  func.func @transform_5(%arg0: i32) -> (i32, i32) {
    %c0_i32 = arith.constant 0 : i32
    %c0_i32_0 = arith.constant 0 : i32
    return %arg0, %c0_i32 : i32, i32
  }
  func.func @transform_6(%arg0: i32) -> (i32, i32) {
    %c0_i32 = arith.constant 0 : i32
    %c0_i32_0 = arith.constant 0 : i32
    return %arg0, %c0_i32 : i32, i32
  }
  func.func @transform_7(%arg0: i32) -> (i32, i32) {
    %c0_i32 = arith.constant 0 : i32
    %c0_i32_0 = arith.constant 0 : i32
    return %arg0, %c0_i32 : i32, i32
  }
  func.func @transform_8(%arg0: i32) -> (i32, i32) {
    %c0_i32 = arith.constant 0 : i32
    %c0_i32_0 = arith.constant 0 : i32
    return %arg0, %c0_i32 : i32, i32
  }
  func.func @transform_9(%arg0: i32) -> (i32, i32) {
    %c0_i32 = arith.constant 0 : i32
    %c0_i32_0 = arith.constant 0 : i32
    return %arg0, %c0_i32 : i32, i32
  }
  func.func @transform_10(%arg0: i32) -> (i32, i32) {
    %c0_i32 = arith.constant 0 : i32
    %c0_i32_0 = arith.constant 0 : i32
    return %arg0, %c0_i32 : i32, i32
  }
  func.func @transform_11(%arg0: i32) -> (i32, i32) {
    %c0_i32 = arith.constant 0 : i32
    %c0_i32_0 = arith.constant 0 : i32
    return %arg0, %c0_i32 : i32, i32
  }
  func.func @transform_12(%arg0: i32) -> (i32, i32) {
    %c0_i32 = arith.constant 0 : i32
    %c0_i32_0 = arith.constant 0 : i32
    return %arg0, %c0_i32 : i32, i32
  }
  func.func @transform_13(%arg0: i32) -> (i32, i32) {
    %c0_i32 = arith.constant 0 : i32
    %c0_i32_0 = arith.constant 0 : i32
    return %arg0, %c0_i32 : i32, i32
  }
  func.func @transform_14(%arg0: i32) -> (i32, i32) {
    %c0_i32 = arith.constant 0 : i32
    %c0_i32_0 = arith.constant 0 : i32
    return %arg0, %c0_i32 : i32, i32
  }
  func.func @transform_15(%arg0: i32) -> (i32, i32) {
    %c0_i32 = arith.constant 0 : i32
    %c0_i32_0 = arith.constant 0 : i32
    return %arg0, %c0_i32 : i32, i32
  }
  func.func @transform_16(%arg0: i32) -> (i32, i32) {
    %c0_i32 = arith.constant 0 : i32
    %c0_i32_0 = arith.constant 0 : i32
    %c0_i32_1 = arith.constant 0 : i32
    return %c0_i32, %c0_i32_0 : i32, i32
  }
}

</mosaic_0001>

<bundles_post_ra>
// kernel: _ae_loss_impl.1
= control target key start
LH: loop header
LB: loop body
LE: loop exit
PB: predicated region body
PF: predicated region fallthrough
CT: control target
= control target key end

     0   :  { %s523_s0 = inlined_call_operand.vmem [shape: f32[1,384], index: 0, kind: input, shape index: {}]   ;;  %s524_s1 = inlined_call_operand.vmem [shape: f32[1,48], index: 1, kind: input, shape index: {}]   ;;  %s525_s2 = inlined_call_operand.vmem [shape: f32[1,24], index: 2, kind: input, shape index: {}]   ;;  %s526_s3 = inlined_call_operand.vmem [shape: f32[1,32], index: 3, kind: input, shape index: {}]   ;;  %s527_s4 = inlined_call_operand.vmem [shape: f32[2,384], index: 4, kind: input, shape index: {}]   ;;  %s528_s5 = inlined_call_operand.vmem [shape: f32[2,384], index: 5, kind: input, shape index: {}]   ;;  %s529_s6 = inlined_call_operand.vmem [shape: f32[2,48], index: 6, kind: input, shape index: {}]   ;;  %s530_s7 = inlined_call_operand.vmem [shape: f32[2,48], index: 7, kind: input, shape index: {}]   ;;  %s531_s8 = inlined_call_operand.vmem [shape: f32[2,24], index: 8, kind: input, shape index: {}]   ;;  %s532_s9 = inlined_call_operand.vmem [shape: f32[2,24], index: 9, kind: input, shape index: {}]   ;;  %s533_s10 = inlined_call_operand.vmem [shape: f32[16,32], index: 10, kind: input, shape index: {}]   ;;  %s534_s11 = inlined_call_operand.vmem [shape: f32[16,32], index: 11, kind: input, shape index: {}]   ;;  %s535_s12 = inlined_call_operand.vmem [shape: f32[16,24], index: 12, kind: input, shape index: {}]   ;;  %s536_s13 = inlined_call_operand.vmem [shape: f32[16,24], index: 13, kind: input, shape index: {}]   ;;  %s537_s14 = inlined_call_operand.vmem [shape: f32[2,24], index: 14, kind: input, shape index: {}]   ;;  %s538_s15 = inlined_call_operand.vmem [shape: f32[2,24], index: 15, kind: input, shape index: {}]   ;;  %s539_s16 = inlined_call_operand.vmem [shape: f32[1,4], index: 16, kind: output, shape index: {}]  }
   0x1   :  { %540 = sst [smem:[#allocation11_spill]] %s523_s0 }
   0x2   :  { %vm61_vm0 = vcmask 189440   ;;  %v86_v0 = vld [vmem:[%s531_s8] sm:$0x3]  ;;  %v348_v2 = vmov 0.0   ;;  %vm59_vm1 = vcmask 386048   ;;  %vm63_vm2 = vcmask 261120  }
   0x3   :  { %v87_v1 = vld [vmem:[%s532_s9] sm:$0x3]  ;;  %62 = vst.msk [vmem:[#allocation4] sm:$0x3] %vm61_vm0, %v348_v2  ;;  %69 = vst.msk [vmem:[#allocation7] sm:$0x3] %vm61_vm0, %v348_v2 }
   0x4   :  { %v88_v3 = vsub.f32 %v86_v0, %v87_v1  ;;  %v123_v4 = vld [vmem:[%s537_s14] sm:$0x3]  ;;  %58 = vst [vmem:[#allocation2] sm:$0x3f] %v348_v2  ;;  %60 = vst.msk [vmem:[#allocation3] sm:$0x3] %vm59_vm1, %v348_v2 }
   0x5   :  { %v124_v5 = vld [vmem:[%s538_s15] sm:$0x3]  ;;  %64 = vst.msk [vmem:[#allocation5] sm:$0xff] %vm63_vm2, %v348_v2  ;;  %65 = vst.msk [vmem:[#allocation5 + $0x8] sm:$0xff] %vm63_vm2, %v348_v2  ;;  %v94_v11 = vld [vmem:[%s533_s10 + $0x8] sm:$0xff]  ;;  %vm66_vm3 = vcmask 195584  }
   0x6   :  { %v125_v6 = vsub.f32 %v123_v4, %v124_v5  ;;  %v78_v7 = vld [vmem:[%s529_s6] sm:$0x3]  ;;  %v96_v13 = vld [vmem:[%s534_s11 + $0x8] sm:$0xff]  ;;  %v89_v14 = vand.u32 2147483647, %v88_v3  ;;  %67 = vst.msk [vmem:[#allocation6] sm:$0xff] %vm66_vm3, %v348_v2 }
   0x7   :  { %v79_v8 = vld [vmem:[%s530_s7] sm:$0x3]  ;;  %v98_v17 = vsub.f32 %v94_v11, %v96_v13  ;;  %v109_v25 = vld [vmem:[%s535_s12 + $0x8] sm:$0xff]  ;;  %68 = vst.msk [vmem:[#allocation6 + $0x8] sm:$0xff] %vm66_vm3, %v348_v2 }
   0x8   :  { %v80_v9 = vsub.f32 %v78_v7, %v79_v8  ;;  %v93_v10 = vld [vmem:[%s533_s10] sm:$0xff]  ;;  %v127_v15 = vmul.f32 %v125_v6, %v125_v6  ;;  %v111_v27 = vld [vmem:[%s536_s13 + $0x8] sm:$0xff] }
   0x9   :  { %v95_v12 = vld [vmem:[%s534_s11] sm:$0xff]  ;;  %v102_v24 = vmul.f32 %v98_v17, %v98_v17 }
   0xa   :  { %v97_v16 = vsub.f32 %v93_v10, %v95_v12  ;;  %v71_v18 = vld [vmem:[%s527_s4] sm:$0x3f]  ;;  %v81_v20 = vand.u32 2147483647, %v80_v9  ;;  %v85_v28 = vld [vmem:[#allocation4] sm:$0x3] }
   0xb   :  { %v72_v19 = vld [vmem:[%s528_s5] sm:$0x3f]  ;;  %v126_v29 = vld [vmem:[#allocation7] sm:$0x3]  ;;  %v90_v31 = vadd.f32 %v89_v14, %v85_v28 }
   0xc   :  { %v73_v21 = vsub.f32 %v71_v18, %v72_v19  ;;  %v108_v22 = vld [vmem:[%s535_s12] sm:$0xff]  ;;  %v101_v23 = vmul.f32 %v97_v16, %v97_v16  ;;  %v128_v32 = vadd.f32 %v127_v15, %v126_v29 }
   0xd   :  { %v110_v26 = vld [vmem:[%s536_s13] sm:$0xff] }
   0xe   :  { %v70_v30 = vld [vmem:[#allocation2] sm:$0x3f]  ;;  %v74_v33 = vand.u32 2147483647, %v73_v21  ;;  %v112_v34 = vsub.f32 %v108_v22, %v110_v26 }
   0xf   :  { %21 = vsyncpa [#allocation9], 0  ;;  %v77_v35 = vld [vmem:[#allocation3] sm:$0x3]  ;;  %v99_v36 = vld [vmem:[#allocation5] sm:$0xff]  ;;  %v136_v38 = vlaneseq  ;;  %v113_v41 = vsub.f32 %v109_v25, %v111_v27  ;;  %s541_s30 = sld [smem:[#allocation11_spill]] }
  0x10   :  { %v100_v37 = vld [vmem:[#allocation5 + $0x8] sm:$0xff]  ;;  %v349_v39 = vmov 1983009808   ;;  %92 = vst.msk [vmem:[#allocation4] sm:$0x3] %vm61_vm0, %v90_v31  ;;  %v82_v42 = vadd.f32 %v81_v20, %v77_v35  ;;  %v103_v43 = vadd.f32 %v101_v23, %v99_v36  ;;  %v75_v45 = vadd.f32 %v74_v33, %v70_v30  ;;  %v114_v50 = vld [vmem:[#allocation6] sm:$0xff] }
  0x11   :  { %v154_v40 = vunpack.c.l.s4 %v349_v39  ;;  %129 = vst.msk [vmem:[#allocation7] sm:$0x3] %vm61_vm0, %v128_v32  ;;  %v104_v44 = vadd.f32 %v102_v24, %v100_v37  ;;  %v116_v46 = vmul.f32 %v112_v34, %v112_v34  ;;  %v117_v47 = vmul.f32 %v113_v41, %v113_v41  ;;  %v115_v51 = vld [vmem:[#allocation6 + $0x8] sm:$0xff]  ;;  %v316_v52 = vld [vmem:[%s525_s2] ss:$0 sm:$0xff]  ;;  %s306_s5 = sshll.u32 %s539_s16, 4  ;;  %s307_s5 = int_to_ptr.vmem [resolvable:$true] %s306_s5 }
  0x12   :  { %84 = vst.msk [vmem:[#allocation3] sm:$0x3] %vm59_vm1, %v82_v42  ;;  %76 = vst [vmem:[#allocation2] sm:$0x3f] %v75_v45  ;;  %v137_v48 = vshrl.u32 %v136_v38, 7  ;;  %vm174_vm4 = vcmask 1041408   ;;  %p339_p1 = scmp.lt.s32.totalorder %s307_s5, %s307_s5 }
  0x13   :  { %106 = vst.msk [vmem:[#allocation5] sm:$0xff] %vm63_vm2, %v103_v43  ;;  %107 = vst.msk [vmem:[#allocation5 + $0x8] sm:$0xff] %vm63_vm2, %v104_v44  ;;  %v155_v49 = vunpack.c.0.s8 %v154_v40  ;;  %v118_v54 = vadd.f32 %v116_v46, %v114_v50  ;;  %v119_v55 = vadd.f32 %v117_v47, %v115_v51  ;;  %v315_v56 = vld [vmem:[%s524_s1] ss:$0 sm:$0xff]  ;;  %s334_s8 = scalar_lea.vmem %s307_s5, 16 }
  0x14   :  { %v138_v53 = vsub.s32 0, %v137_v48  ;;  %v317_v59 = vld [vmem:[%s526_s3] ss:$0 sm:$0xff]  ;;  %v142_v60 = vsub.s32 1, %v137_v48  ;;  %v146_v61 = vsub.s32 2, %v137_v48  ;;  %p335_p0 = scmp.ne.s32.totalorder %s307_s5, %s334_s8  ;;  %p340_p2 = scmp.lt.s32.totalorder %s334_s8, %s334_s8 }
  0x15   :  { %v133_v57 = vld [vmem:[%s541_s30] sm:$0x7]  ;;  %v158_v62 = vsub.s32 %v155_v49, %v137_v48  ;;  %121 = vst.msk [vmem:[#allocation6] sm:$0xff] %vm66_vm3, %v118_v54  ;;  %122 = vst.msk [vmem:[#allocation6 + $0x8] sm:$0xff] %vm66_vm3, %v119_v55 }
  0x16   :  { %v139_v3 = vrot.slane %v133_v57, %v138_v53  ;;  %v143_v9 = vrot.slane %v133_v57, %v142_v60  ;;  %v147_v10 = vrot.slane %v133_v57, %v146_v61  ;;  %p341_p3 = por %p340_p2, %p339_p1 }
  0x17   :  { %v209_v58 = vld [vmem:[#allocation4] sm:$0x3] }
  0x18   :  { %v216_v63 = vmul.f32 %v316_v52, %v209_v58  ;;  %v266_v17 = vld [vmem:[#allocation7] sm:$0x3]  ;;  %p342_p4 = pnand %p341_p3, %p335_p0 }
  0x19   :  { %v190_v0 = vld [vmem:[#allocation3] sm:$0x3]  ;;  %v134_v8 = vld [vmem:[#allocation2] sm:$0x3f]  ;;  %v267_v27 = vsel %vm61_vm0, %v266_v17, 0.0 }
  0x1a   :  { %v228_v1 = vld [vmem:[#allocation5] sm:$0xff]  ;;  %v229_v2 = vld [vmem:[#allocation5 + $0x8] sm:$0xff]  ;;  %v217_v4 = vsel %vm61_vm0, %v216_v63, 0.0  ;;  %v197_v5 = vmul.f32 %v315_v56, %v190_v0  ;;  %v152_v11 = vcombine.high %v134_v8, %v134_v8  ;;  %v159_v12 = vrot.slane %v134_v8, %v158_v62 }
  0x1b   :  { %v236_v6 = vmul.f32 %v317_v59, %v228_v1  ;;  %v237_v7 = vmul.f32 %v317_v59, %v229_v2  ;;  %218 = vadd.xlane.f32.xlu1 %v217_v4 }
  0x1c   :  { %v198_v13 = vsel %vm59_vm1, %v197_v5, 0.0  ;;  %v166_v18 = vrot.slane %v152_v11, %v158_v62  ;;  %v167_v19 = vcombine.high %v159_v12, %v159_v12  ;;  %v171_v20 = vmul.f32 %v159_v12, %v139_v3  ;;  %v250_v21 = vld [vmem:[#allocation6] sm:$0xff]  ;;  %v251_v22 = vld [vmem:[#allocation6 + $0x8] sm:$0xff] }
  0x1d   :  { %v238_v14 = vsel %vm63_vm2, %v236_v6, 0.0  ;;  %v239_v15 = vsel %vm63_vm2, %v237_v7, 0.0  ;;  %199 = vadd.xlane.f32.xlu0 %v198_v13  ;;  %v252_v26 = vmul.f32 %v316_v52, %v250_v21  ;;  %v253_v28 = vmul.f32 %v316_v52, %v251_v22 }
  0x1e   :  { %v240_v16 = vadd.f32 %v239_v15, %v238_v14  ;;  %v172_v23 = vmul.f32 %v167_v19, %v143_v9  ;;  %v173_v24 = vmul.f32 %v166_v18, %v147_v10  ;;  %v175_v25 = vsel %vm174_vm4, %v171_v20, 0.0 }
  0x1f   :  { %v254_v32 = vsel %vm66_vm3, %v252_v26, 0.0  ;;  %v255_v33 = vsel %vm66_vm3, %v253_v28, 0.0 }
  0x20   :  { %241 = vadd.xlane.f32.xlu1 %v240_v16  ;;  %v176_v29 = vsel %vm174_vm4, %v172_v23, 0.0  ;;  %v178_v30 = vsel %vm174_vm4, %v173_v24, 0.0  ;;  %v256_v35 = vadd.f32 %v255_v33, %v254_v32 }
  0x21   :  { %v177_v31 = vadd.f32 %v176_v29, %v175_v25 }
  0x23   :  { %v179_v34 = vadd.f32 %v178_v30, %v177_v31 }
  0x24   :  { %268 = vadd.xlane.f32.xlu1 %v267_v27 }
  0x25   :  { %180 = vadd.xlane.f32.xlu0 %v179_v34 }
  0x29   :  { %257 = vadd.xlane.f32.xlu0 %v256_v35 }
  0xa8   :  { %v219_v36 = vpop.xlane.xlu1 %218 }
  0xa9   :  { %v220_v39 = vrot.slane %v219_v36, 4 }
  0xaa   :  { %v200_v37 = vpop.xlane.xlu0 %199 }
  0xab   :  { %v201_v38 = vrot.slane %v200_v37, 4  ;;  %v221_v43 = vadd.f32 %v220_v39, %v219_v36 }
  0xad   :  { %v242_v40 = vpop.xlane.xlu1 %241  ;;  %v202_v42 = vadd.f32 %v201_v38, %v200_v37  ;;  %v222_v50 = vrot.slane %v221_v43, 2 }
  0xae   :  { %v243_v41 = vrot.slane %v242_v40, 4 }
  0xaf   :  { %v203_v47 = vrot.slane %v202_v42, 2  ;;  %v223_v59 = vadd.f32 %v222_v50, %v221_v43 }
  0xb0   :  { %v244_v45 = vadd.f32 %v243_v41, %v242_v40 }
  0xb1   :  { %v269_v44 = vpop.xlane.xlu1 %268  ;;  %v204_v56 = vadd.f32 %v203_v47, %v202_v42  ;;  %v224_v3 = vrot.slane %v223_v59, 1 }
  0xb2   :  { %v270_v46 = vrot.slane %v269_v44, 4  ;;  %v181_v49 = vpop.xlane.xlu0 %180  ;;  %v245_v52 = vrot.slane %v244_v45, 2 }
  0xb3   :  { %v182_v51 = vrot.slane %v181_v49, 4  ;;  %v205_v0 = vrot.slane %v204_v56, 1  ;;  %v225_v9 = vadd.f32 %v224_v3, %v223_v59 }
  0xb4   :  { %v271_v48 = vadd.f32 %v270_v46, %v269_v44  ;;  %v246_v60 = vadd.f32 %v245_v52, %v244_v45 }
  0xb5   :  { %v183_v53 = vadd.f32 %v182_v51, %v181_v49  ;;  %v206_v7 = vadd.f32 %v205_v0, %v204_v56 }
  0xb6   :  { %v272_v54 = vrot.slane %v271_v48, 2  ;;  %v258_v55 = vpop.xlane.xlu0 %257  ;;  %v247_v4 = vrot.slane %v246_v60, 1 }
  0xb7   :  { %v184_v57 = vrot.slane %v183_v53, 2  ;;  %v259_v58 = vrot.slane %v258_v55, 4 }
  0xb8   :  { %v273_v63 = vadd.f32 %v272_v54, %v271_v48  ;;  %v248_v11 = vadd.f32 %v247_v4, %v246_v60 }
  0xb9   :  { %v260_v61 = vadd.f32 %v259_v58, %v258_v55  ;;  %v185_v62 = vadd.f32 %v184_v57, %v183_v53 }
  0xba   :  { %v274_v8 = vrot.slane %v273_v63, 1 }
  0xbb   :  { %v261_v1 = vrot.slane %v260_v61, 2  ;;  %v186_v2 = vrot.slane %v185_v62, 1 }
  0xbc   :  { %v275_v13 = vadd.f32 %v274_v8, %v273_v63 }
  0xbd   :  { %v262_v5 = vadd.f32 %v261_v1, %v260_v61  ;;  %v187_v6 = vadd.f32 %v186_v2, %v185_v62 }
  0xbf   :  { %318 = vpush %v187_v6  ;;  %v263_v10 = vrot.slane %v262_v5, 1 }
  0xc0   :  { %320 = vpush %v206_v7 }
  0xc1   :  { %322 = vpush %v225_v9  ;;  %v264_v12 = vadd.f32 %v263_v10, %v262_v5 }
  0xc2   :  { %324 = vpush %v248_v11 }
  0xc3   :  { %326 = vpush %v264_v12 }
  0xc4   :  { %328 = vpush %v275_v13 }
  0xf0   :  { %s319_s1 = spop %318 }
  0xf1   :  { %s277_s2 = smul.f32 5.0, %s319_s1  ;;  %s321_s3 = spop %320 }
  0xf2   :  { %s279_s0 = smul.f32 10.0, %s321_s3  ;;  %s323_s17 = spop %322 }
  0xf3   :  { %s278_s6 = smul.f32 0.0013020834, %s277_s2  ;;  %s325_s18 = spop %324 }
  0xf4   :  { %s280_s7 = smul.f32 0.010416667, %s279_s0  ;;  %s327_s19 = spop %326 }
  0xf5   :  { %s282_s20 = smul.f32 0.020833334, %s323_s17  ;;  %s329_s21 = spop %328 }
  0xf6   :  { %s281_s22 = sadd.f32 %s280_s7, %s278_s6  ;;  %s284_s23 = smul.f32 2.5, %s327_s19 }
  0xf7   :  { %297 = sst [smem:[#allocation8 + $0x2]] %s282_s20  ;;  %s286_s10 = smul.f32 0.020833334, %s329_s21 }
  0xf8   :  { %295 = sst [smem:[#allocation8 + $0x1]] %s281_s22  ;;  %s285_s24 = smul.f32 0.0026041667, %s284_s23 }
  0xf9   :  { %s283_s25 = smul.f32 0.001953125, %s325_s18  ;;  %s290_s27 = sadd.f32 %s282_s20, %s281_s22 }
  0xfa   :  { %s287_s11 = sadd.f32 %s286_s10, %s285_s24 }
  0xfc   :  { %s288_s26 = smul.f32 2.0, %s287_s11 }
  0xfe   :  { %s289_s12 = sadd.f32 %s288_s26, %s283_s25 }
 0x100   :  { %s291_s13 = sadd.f32 %s290_s27, %s289_s12 }
 0x101   :  { %299 = sst [smem:[#allocation8 + $0x3]] %s289_s12 }
 0x102   :  { %293 = sst [smem:[#allocation8]] %s291_s13 }
 0x103   :  { %345 = shalt.err (!%p342_p4)
}
 0x104   :  { %s350_s29 = smov [#allocation8]  }
 0x105   :  { %309 = dma.smem_to_vmem %s350_s29, 16, %s307_s5, [#allocation9]  }
 0x106   :  { %346 = dma.done.wait [#allocation9], 16  }
 0x107   :  { %347 = vsyncadd [#allocation9], 4294967280 }
 0x108   :  { %313 = sfence }
 0x109   :  { %314 = vsyncpa [#allocation9], 1 }

</bundles_post_ra>
